<compile_context>
chip_gen: v6e
topology: v6e:2x2x1
jax: 0.10.0
libtpu: 0.0.40
codegen_flags: <defaults>
</compile_context>

<pallas_src>
import functools

import jax
import jax.numpy as jnp
from jax.experimental import pallas as pl
from jax.experimental.pallas import tpu as pltpu


_VMEM_LIMIT = 32 * 1024 * 1024  # well under the scoped-VMEM budget on v5e/v6e/v7x


# ---------------------------------------------------------------------------
# Weight preparation (tiny one-time XLA work; turns every conv into matmuls)
# ---------------------------------------------------------------------------
def _upconv_weight_slabs(w_pt, b, w1):
    """PyTorch ConvTranspose2d weight (Cin, Cup, 2, 2) -> per-parity matmul slabs.

    wup[di][(j, c), (2J + dj)*Cup + co] = (j == J) * w_pt[c, co, di, dj]
    so that  x1_row_i @ wup[di]  is upsampled row 2*i+di with lanes (col, co).
    """
    cin, cup = w_pt.shape[0], w_pt.shape[1]
    eye = jnp.eye(w1, dtype=jnp.float32)
    wup = jnp.stack([
        jnp.einsum("jJ,cod->jcJdo", eye, w_pt[:, :, di, :].astype(jnp.float32))
        .reshape(w1 * cin, 2 * w1 * cup)
        for di in range(2)
    ]).astype(jnp.bfloat16)
    upb = jnp.tile(b.astype(jnp.float32), 2 * w1).reshape(1, 2 * w1 * cup)
    return wup, upb


def _row_interleave_mats(h1):
    """(2, 2*H1, H1) 0/1 matrices so that sum_di D[di] @ u_di interleaves the two
    row parities: result row r = u_{r%2}[r//2].  Keeps the interleave on the MXU."""
    r = jnp.arange(2 * h1)[:, None]
    i = jnp.arange(h1)[None, :]
    sel = r // 2 == i
    d0 = (sel & (r % 2 == 0)).astype(jnp.bfloat16)
    d1 = (sel & (r % 2 == 1)).astype(jnp.bfloat16)
    return jnp.stack([d0, d1])


def _conv3x3_toeplitz(w_hwio, w):
    """(3,3,Cin,Cout) -> (3, W*Cin, W*Cout) banded weights: one matmul over
    lanes=(width, channel) performs all kw taps (incl. zero column padding) of the
    3x3 conv for one kh row tap."""
    cin, cout = w_hwio.shape[2], w_hwio.shape[3]
    mats = []
    for kh in range(3):
        acc = jnp.zeros((w * cin, w * cout), jnp.float32)
        for kw in range(3):
            # sel[q, j] = (q == j + kw - 1); out-of-range taps are simply dropped,
            # which is exactly the zero column padding.
            sel = jnp.eye(w, w, k=1 - kw, dtype=jnp.float32)
            acc = acc + jnp.einsum(
                "qj,co->qcjo", sel, w_hwio[kh, kw].astype(jnp.float32)
            ).reshape(w * cin, w * cout)
        mats.append(acc)
    return jnp.stack(mats)


def _fold_bn(lp, eps=1e-5):
    scale = lp["gamma"] / jnp.sqrt(lp["running_var"] + eps)
    shift = lp["beta"] - lp["running_mean"] * scale
    return scale, shift


# ---------------------------------------------------------------------------
# Fused forward: upconv + pad + concat + N x (Conv3x3 + BN + ReLU) in one kernel
# ---------------------------------------------------------------------------
def upncbr_forward(params, x1_nchw, x2_nchw, skip=False, skipcat=False):
    """Matches UpNCBR.forward.  Inputs/outputs in PyTorch NCHW layout (f32)."""
    x1 = jnp.transpose(x1_nchw, (0, 2, 3, 1))  # -> NHWC
    x2 = jnp.transpose(x2_nchw, (0, 2, 3, 1))
    n, h1, w1, cin = x1.shape
    n2, h, w, c2 = x2.shape
    assert n2 == n
    cup = cin // 2
    layers = params["layers"]
    n_layers = len(layers)
    assert n_layers >= 2, "NCBR requires N > 1"
    ccat = c2 + cup
    assert layers[0]["w_pt"].shape[1] == ccat
    cout = layers[0]["w_pt"].shape[0]
    diff_y, diff_x = h - 2 * h1, w - 2 * w1
    assert diff_y >= 0 and diff_x >= 0
    dy0, dx0 = diff_y // 2, diff_x // 2

    # ---- fold everything into lane-major matmul slabs -----------------------
    wup, upb = _upconv_weight_slabs(params["up_w"], params["up_b"], w1)
    dmat = _row_interleave_mats(h1)

    scale0, shift0 = _fold_bn(layers[0])
    w_hwio0 = jnp.transpose(layers[0]["w_pt"], (2, 3, 1, 0)) * scale0[None, None, None, :]
    wt2 = _conv3x3_toeplitz(w_hwio0[:, :, :c2, :], w).astype(jnp.bfloat16)  # x2 part
    wt1 = _conv3x3_toeplitz(w_hwio0[:, :, c2:, :], w).astype(jnp.bfloat16)  # x1 part

    wrest, shifts = [], [jnp.tile(shift0, w)]
    for lp in layers[1:]:
        s, sh = _fold_bn(lp)
        w_hwio = jnp.transpose(lp["w_pt"], (2, 3, 1, 0)) * s[None, None, None, :]
        wrest.append(_conv3x3_toeplitz(w_hwio, w))
        shifts.append(jnp.tile(sh, w))
    wrest = jnp.concatenate(wrest, axis=0).astype(jnp.bfloat16)  # ((N-1)*3, W*Cout, W*Cout)
    shifts = jnp.stack(shifts).astype(jnp.float32)               # (N, W*Cout)

    x1_2d = x1.reshape(n, h1, w1 * cin).astype(jnp.float32)
    x2_2d = x2.reshape(n, h, w * c2).astype(jnp.float32)

    l_out = w * cout
    two_outputs = bool(skip and skipcat)

    def kernel(x1_ref, x2_ref, wup_ref, d_ref, upb_ref, wt2_ref, wt1_ref,
               wrest_ref, shift_ref, *rest):
        if two_outputs:
            o_ref, o1_ref, slab2, slab1, slabm = rest
        else:
            o_ref, slab2, slab1, slabm = rest
            o1_ref = None

        f32, bf16 = jnp.float32, jnp.bfloat16

        # -- ConvTranspose2d(k=2, s=2): per-parity matmuls + MXU row interleave --
        x1b = x1_ref[0].astype(bf16)                                    # (H1, W1*Cin)
        u0 = jnp.dot(x1b, wup_ref[0], preferred_element_type=f32).astype(bf16)
        u1 = jnp.dot(x1b, wup_ref[1], preferred_element_type=f32).astype(bf16)
        core = (jnp.dot(d_ref[0], u0, preferred_element_type=f32)
                + jnp.dot(d_ref[1], u1, preferred_element_type=f32)
                + upb_ref[...])                                         # (2H1, 2W1*Cup) f32

        # -- assemble the two row-halo slabs of the first conv in VMEM ----------
        zero2 = jnp.zeros((1, w * c2), f32)
        slab2[0:1, :] = zero2
        slab2[h + 1:h + 2, :] = zero2
        slab2[1:h + 1, :] = x2_ref[0]

        slab1[...] = jnp.zeros_like(slab1)   # also covers the F.pad(diff) zeros
        slab1[1 + dy0:1 + dy0 + 2 * h1, dx0 * cup:(dx0 + 2 * w1) * cup] = core

        # -- layer 0: conv3x3(concat[x2, up(x1)]) + BN + ReLU, concat split across
        #    two Toeplitz weight slabs (no channel-interleave / HBM concat needed)
        acc = jnp.dot(slab2[0:h, :].astype(bf16), wt2_ref[0], preferred_element_type=f32)
        for kh in range(1, 3):
            acc = acc + jnp.dot(slab2[kh:kh + h, :].astype(bf16), wt2_ref[kh],
                                preferred_element_type=f32)
        for kh in range(3):
            acc = acc + jnp.dot(slab1[kh:kh + h, :].astype(bf16), wt1_ref[kh],
                                preferred_element_type=f32)
        y = jnp.maximum(acc + shift_ref[0:1, :], 0.0)
        y_first = y

        # -- layers 1..N-1: intermediate activations never leave VMEM -----------
        zm = jnp.zeros((1, l_out), f32)
        slabm[0:1, :] = zm
        slabm[h + 1:h + 2, :] = zm
        for l in range(1, n_layers):
            slabm[1:h + 1, :] = y
            acc = jnp.dot(slabm[0:h, :].astype(bf16), wrest_ref[(l - 1) * 3],
                          preferred_element_type=f32)
            for kh in range(1, 3):
                acc = acc + jnp.dot(slabm[kh:kh + h, :].astype(bf16),
                                    wrest_ref[(l - 1) * 3 + kh],
                                    preferred_element_type=f32)
            y = jnp.maximum(acc + shift_ref[l:l + 1, :], 0.0)

        if skip and not skipcat:
            y = y + y_first
        o_ref[0] = y.astype(o_ref.dtype)
        if two_outputs:
            o1_ref[0] = y_first.astype(o1_ref.dtype)

    out_shapes = [jax.ShapeDtypeStruct((n, h, l_out), jnp.float32)]
    out_specs = [pl.BlockSpec((1, h, l_out), lambda b: (b, 0, 0))]
    if two_outputs:
        out_shapes.append(jax.ShapeDtypeStruct((n, h, l_out), jnp.float32))
        out_specs.append(pl.BlockSpec((1, h, l_out), lambda b: (b, 0, 0)))

    flops = 2 * n * (
        2 * h1 * (w1 * cin) * (2 * w1 * cup)          # upconv per-parity matmuls
        + 2 * (2 * h1) * h1 * (2 * w1 * cup)          # row-interleave matmuls
        + 3 * h * (w * (c2 + cup)) * l_out            # layer 0
        + (n_layers - 1) * 3 * h * (w * cout) * l_out)
    bytes_accessed = (
        4 * (x1_2d.size + x2_2d.size + len(out_shapes) * n * h * l_out
             + upb.size + shifts.size)
        + 2 * (wup.size + dmat.size + wt2.size + wt1.size + wrest.size))

    outs = pl.pallas_call(
        kernel,
        out_shape=tuple(out_shapes) if two_outputs else out_shapes[0],
        grid=(n,),
        in_specs=[
            pl.BlockSpec((1, h1, w1 * cin), lambda b: (b, 0, 0)),
            pl.BlockSpec((1, h, w * c2), lambda b: (b, 0, 0)),
            pl.BlockSpec(wup.shape, lambda b: (0, 0, 0)),
            pl.BlockSpec(dmat.shape, lambda b: (0, 0, 0)),
            pl.BlockSpec(upb.shape, lambda b: (0, 0)),
            pl.BlockSpec(wt2.shape, lambda b: (0, 0, 0)),
            pl.BlockSpec(wt1.shape, lambda b: (0, 0, 0)),
            pl.BlockSpec(wrest.shape, lambda b: (0, 0, 0)),
            pl.BlockSpec(shifts.shape, lambda b: (0, 0)),
        ],
        out_specs=tuple(out_specs) if two_outputs else out_specs[0],
        scratch_shapes=[
            pltpu.VMEM((h + 2, w * c2), jnp.float32),    # padded x2 slab
            pltpu.VMEM((h + 2, w * cup), jnp.float32),   # padded upsampled-x1 slab
            pltpu.VMEM((h + 2, w * cout), jnp.float32),  # inter-layer slab
        ],
        compiler_params=pltpu.CompilerParams(
            dimension_semantics=("parallel",),
            vmem_limit_bytes=_VMEM_LIMIT,
        ),
        cost_estimate=pl.CostEstimate(
            flops=flops, transcendentals=0, bytes_accessed=bytes_accessed),
    )(x1_2d, x2_2d, wup, dmat, upb, wt2, wt1, wrest, shifts)

    if two_outputs:
        y_last, y0 = outs
        x = jnp.concatenate(
            [y_last.reshape(n, h, w, cout), y0.reshape(n, h, w, cout)], axis=-1)
    else:
        x = outs.reshape(n, h, w, cout)
    return jnp.transpose(x, (0, 3, 1, 2))  # back to NCHW (already f32)


# ---------------------------------------------------------------------------
# Parameter construction (deterministic, synthetic) + pure-JAX f32 reference
# ---------------------------------------------------------------------------
def make_params(key, in_channels, out_channels, n_layers):
    ks = jax.random.split(key, 2 + 4 * n_layers)
    params = {}
    up_out = in_channels // 2
    params["up_w"] = 0.1 * jax.random.normal(ks[0], (in_channels, up_out, 2, 2), jnp.float32)
    params["up_b"] = 0.1 * jax.random.normal(ks[1], (up_out,), jnp.float32)

    chans = [in_channels] + [out_channels] * n_layers
    layers = []
    for i in range(n_layers):
        kw_, kg, kb, km = ks[2 + 4 * i: 2 + 4 * i + 4]
        cin, cout = chans[i], chans[i + 1]
        w_pt = 0.1 * jax.random.normal(kw_, (cout, cin, 3, 3), jnp.float32)  # OIHW
        gamma = 1.0 + 0.1 * jax.random.normal(kg, (cout,), jnp.float32)
        beta = 0.1 * jax.random.normal(kb, (cout,), jnp.float32)
        r_mean = 0.1 * jax.random.normal(km, (cout,), jnp.float32)
        r_var = jnp.ones((cout,), jnp.float32)
        layers.append(dict(w_pt=w_pt, gamma=gamma, beta=beta,
                           running_mean=r_mean, running_var=r_var))
    params["layers"] = layers
    return params


def _reference_forward(params, x1_nchw, x2_nchw, skip=False, skipcat=False):
    """Pure-JAX f32 reference matching the PyTorch module (eval-mode BN)."""
    hi = jax.lax.Precision.HIGHEST
    up = jnp.einsum("ncij,codq->noidjq", x1_nchw, params["up_w"], precision=hi)
    n, cup, h1, _, w1, _ = up.shape
    up = up.reshape(n, cup, 2 * h1, 2 * w1) + params["up_b"][None, :, None, None]
    h, w = x2_nchw.shape[2], x2_nchw.shape[3]
    dy, dx = h - 2 * h1, w - 2 * w1
    up = jnp.pad(up, ((0, 0), (0, 0), (dy // 2, dy - dy // 2), (dx // 2, dx - dx // 2)))
    x = jnp.concatenate([x2_nchw, up], axis=1)
    eps = 1e-5
    x_first = None
    for i, lp in enumerate(params["layers"]):
        y = jax.lax.conv_general_dilated(
            x, lp["w_pt"], window_strides=(1, 1), padding=((1, 1), (1, 1)),
            dimension_numbers=("NCHW", "OIHW", "NCHW"), precision=hi)
        scale = lp["gamma"] / jnp.sqrt(lp["running_var"] + eps)
        shift = lp["beta"] - lp["running_mean"] * scale
        x = jnp.maximum(y * scale[None, :, None, None] + shift[None, :, None, None], 0.0)
        if i == 0:
            x_first = x
    if skip:
        x = jnp.concatenate([x, x_first], axis=1) if skipcat else x + x_first
    return x


if __name__ == "__main__":
    key = jax.random.PRNGKey(0)
    k_p, k1, k2 = jax.random.split(key, 3)

    in_channels, out_channels, n_layers = 8, 8, 2
    batch = 2

    params = make_params(k_p, in_channels, out_channels, n_layers)

    # x1: low-res feature map (NCHW); x2: skip connection at 2x spatial (NCHW)
    x1 = jax.random.normal(k1, (batch, in_channels, 8, 8), jnp.float32)
    x2 = jax.random.normal(k2, (batch, in_channels // 2, 16, 16), jnp.float32)

    fwd = jax.jit(functools.partial(upncbr_forward, skip=False, skipcat=False))
    out = fwd(params, x1, x2)
    out = jax.block_until_ready(out)

    assert out.shape == (batch, out_channels, 16, 16), out.shape
    assert bool(jnp.all(jnp.isfinite(out)))

    # Tolerance check against the pure-JAX f32 reference (kernel runs bf16 on the MXU).
    ref = _reference_forward(params, x1, x2, skip=False, skipcat=False)
    max_err = float(jnp.max(jnp.abs(out - ref)))
    assert max_err < 0.1, f"max abs err vs reference: {max_err}"

    print("KERNEL_OK")
</pallas_src>

<mosaic_0001>
module attributes {stable_mosaic.version = 11 : i64} {
  func.func @kernel(%arg0: i32, %arg1: memref<1x8x64xf32, #tpu.memory_space<vmem>>, %arg2: memref<1x16x64xf32, #tpu.memory_space<vmem>>, %arg3: memref<2x64x64xbf16, #tpu.memory_space<vmem>>, %arg4: memref<2x16x8xbf16, #tpu.memory_space<vmem>>, %arg5: memref<1x64xf32, #tpu.memory_space<vmem>>, %arg6: memref<3x64x128xbf16, #tpu.memory_space<vmem>>, %arg7: memref<3x64x128xbf16, #tpu.memory_space<vmem>>, %arg8: memref<3x128x128xbf16, #tpu.memory_space<vmem>>, %arg9: memref<2x128xf32, #tpu.memory_space<vmem>>, %arg10: memref<1x16x128xf32, #tpu.memory_space<vmem>>, %arg11: memref<18x64xf32, #tpu.memory_space<vmem>>, %arg12: memref<18x64xf32, #tpu.memory_space<vmem>>, %arg13: memref<18x128xf32, #tpu.memory_space<vmem>>) attributes {dimension_semantics = [#tpu.dimension_semantics<parallel>], iteration_bounds = array<i64: 2>, scalar_prefetch = 0 : i64, scratch_operands = 3 : i64, tpu.core_type = #tpu.core_type<tc>, window_params = [{transform_indices = @transform_0, window_bounds = array<i64: 1, 8, 64>}, {transform_indices = @transform_1, window_bounds = array<i64: 1, 16, 64>}, {pipeline_mode = #tpu.pipeline_mode<synchronous>, transform_indices = @transform_2, window_bounds = array<i64: 2, 64, 64>}, {pipeline_mode = #tpu.pipeline_mode<synchronous>, transform_indices = @transform_3, window_bounds = array<i64: 2, 16, 8>}, {pipeline_mode = #tpu.pipeline_mode<synchronous>, transform_indices = @transform_4, window_bounds = array<i64: 1, 64>}, {pipeline_mode = #tpu.pipeline_mode<synchronous>, transform_indices = @transform_5, window_bounds = array<i64: 3, 64, 128>}, {pipeline_mode = #tpu.pipeline_mode<synchronous>, transform_indices = @transform_6, window_bounds = array<i64: 3, 64, 128>}, {pipeline_mode = #tpu.pipeline_mode<synchronous>, transform_indices = @transform_7, window_bounds = array<i64: 3, 128, 128>}, {pipeline_mode = #tpu.pipeline_mode<synchronous>, transform_indices = @transform_8, window_bounds = array<i64: 2, 128>}, {transform_indices = @transform_9, window_bounds = array<i64: 1, 16, 128>}]} {
    %c0 = arith.constant 0 : index
    %c0_0 = arith.constant 0 : index
    %c0_1 = arith.constant 0 : index
    %0 = vector.load %arg1[%c0, %c0_0, %c0_1] : memref<1x8x64xf32, #tpu.memory_space<vmem>>, vector<1x8x64xf32>
    %1 = vector.shape_cast %0 : vector<1x8x64xf32> to vector<8x64xf32>
    %2 = arith.truncf %1 : vector<8x64xf32> to vector<8x64xbf16>
    %c0_2 = arith.constant 0 : index
    %c0_3 = arith.constant 0 : index
    %c0_4 = arith.constant 0 : index
    %3 = vector.load %arg3[%c0_2, %c0_3, %c0_4] : memref<2x64x64xbf16, #tpu.memory_space<vmem>>, vector<1x64x64xbf16>
    %4 = vector.shape_cast %3 : vector<1x64x64xbf16> to vector<64x64xbf16>
    %cst = arith.constant dense<0.000000e+00> : vector<8x64xf32>
    %5 = tpu.matmul %2, %4, %cst {dimension_numbers = #tpu.dot_dimension_numbers<[1], [0], [0], [1], [0, 0, 1, 1], [], []>} : vector<8x64xbf16>, vector<64x64xbf16>, vector<8x64xf32> -> vector<8x64xf32>
    %6 = arith.truncf %5 : vector<8x64xf32> to vector<8x64xbf16>
    %c1 = arith.constant 1 : index
    %c0_5 = arith.constant 0 : index
    %c0_6 = arith.constant 0 : index
    %7 = vector.load %arg3[%c1, %c0_5, %c0_6] : memref<2x64x64xbf16, #tpu.memory_space<vmem>>, vector<1x64x64xbf16>
    %8 = vector.shape_cast %7 : vector<1x64x64xbf16> to vector<64x64xbf16>
    %cst_7 = arith.constant dense<0.000000e+00> : vector<8x64xf32>
    %9 = tpu.matmul %2, %8, %cst_7 {dimension_numbers = #tpu.dot_dimension_numbers<[1], [0], [0], [1], [0, 0, 1, 1], [], []>} : vector<8x64xbf16>, vector<64x64xbf16>, vector<8x64xf32> -> vector<8x64xf32>
    %10 = arith.truncf %9 : vector<8x64xf32> to vector<8x64xbf16>
    %c0_8 = arith.constant 0 : index
    %c0_9 = arith.constant 0 : index
    %c0_10 = arith.constant 0 : index
    %11 = vector.load %arg4[%c0_8, %c0_9, %c0_10] : memref<2x16x8xbf16, #tpu.memory_space<vmem>>, vector<1x16x8xbf16>
    %12 = vector.shape_cast %11 : vector<1x16x8xbf16> to vector<16x8xbf16>
    %cst_11 = arith.constant dense<0.000000e+00> : vector<16x64xf32>
    %13 = tpu.matmul %12, %6, %cst_11 {dimension_numbers = #tpu.dot_dimension_numbers<[1], [0], [0], [1], [0, 0, 1, 1], [], []>} : vector<16x8xbf16>, vector<8x64xbf16>, vector<16x64xf32> -> vector<16x64xf32>
    %c1_12 = arith.constant 1 : index
    %c0_13 = arith.constant 0 : index
    %c0_14 = arith.constant 0 : index
    %14 = vector.load %arg4[%c1_12, %c0_13, %c0_14] : memref<2x16x8xbf16, #tpu.memory_space<vmem>>, vector<1x16x8xbf16>
    %15 = vector.shape_cast %14 : vector<1x16x8xbf16> to vector<16x8xbf16>
    %cst_15 = arith.constant dense<0.000000e+00> : vector<16x64xf32>
    %16 = tpu.matmul %15, %10, %cst_15 {dimension_numbers = #tpu.dot_dimension_numbers<[1], [0], [0], [1], [0, 0, 1, 1], [], []>} : vector<16x8xbf16>, vector<8x64xbf16>, vector<16x64xf32> -> vector<16x64xf32>
    %17 = arith.addf %13, %16 : vector<16x64xf32>
    %c0_16 = arith.constant 0 : index
    %c0_17 = arith.constant 0 : index
    %18 = vector.load %arg5[%c0_16, %c0_17] : memref<1x64xf32, #tpu.memory_space<vmem>>, vector<1x64xf32>
    %19 = vector.broadcast %18 : vector<1x64xf32> to vector<16x64xf32>
    %20 = arith.addf %17, %19 : vector<16x64xf32>
    %cst_18 = arith.constant 0.000000e+00 : f32
    %21 = vector.broadcast %cst_18 : f32 to vector<1x64xf32>
    %c0_19 = arith.constant 0 : index
    %c0_20 = arith.constant 0 : index
    %22 = vector.load %arg11[%c0_19, %c0_20] : memref<18x64xf32, #tpu.memory_space<vmem>>, vector<1x64xf32>
    tpu.vector_store %arg11[%c0_19, %c0_20], %21 {strides = array<i32>} : memref<18x64xf32, #tpu.memory_space<vmem>>, vector<1x64xf32>,
    %c17 = arith.constant 17 : index
    %c0_21 = arith.constant 0 : index
    %23 = vector.load %arg11[%c17, %c0_21] : memref<18x64xf32, #tpu.memory_space<vmem>>, vector<1x64xf32>
    tpu.vector_store %arg11[%c17, %c0_21], %21 {strides = array<i32>} : memref<18x64xf32, #tpu.memory_space<vmem>>, vector<1x64xf32>,
    %c0_22 = arith.constant 0 : index
    %c0_23 = arith.constant 0 : index
    %c0_24 = arith.constant 0 : index
    %24 = vector.load %arg2[%c0_22, %c0_23, %c0_24] : memref<1x16x64xf32, #tpu.memory_space<vmem>>, vector<1x16x64xf32>
    %25 = vector.shape_cast %24 : vector<1x16x64xf32> to vector<16x64xf32>
    %c1_25 = arith.constant 1 : index
    %c0_26 = arith.constant 0 : index
    %26 = vector.load %arg11[%c1_25, %c0_26] : memref<18x64xf32, #tpu.memory_space<vmem>>, vector<16x64xf32>
    tpu.vector_store %arg11[%c1_25, %c0_26], %25 {strides = array<i32>} : memref<18x64xf32, #tpu.memory_space<vmem>>, vector<16x64xf32>,
    %cst_27 = arith.constant 0.000000e+00 : f32
    %27 = vector.broadcast %cst_27 : f32 to vector<18x64xf32>
    %c0_28 = arith.constant 0 : index
    %c0_29 = arith.constant 0 : index
    %28 = vector.load %arg12[%c0_28, %c0_29] : memref<18x64xf32, #tpu.memory_space<vmem>>, vector<18x64xf32>
    tpu.vector_store %arg12[%c0_28, %c0_29], %27 {strides = array<i32>} : memref<18x64xf32, #tpu.memory_space<vmem>>, vector<18x64xf32>,
    %c1_30 = arith.constant 1 : index
    %c0_31 = arith.constant 0 : index
    %29 = vector.load %arg12[%c1_30, %c0_31] : memref<18x64xf32, #tpu.memory_space<vmem>>, vector<16x64xf32>
    tpu.vector_store %arg12[%c1_30, %c0_31], %20 {strides = array<i32>} : memref<18x64xf32, #tpu.memory_space<vmem>>, vector<16x64xf32>,
    %c0_32 = arith.constant 0 : index
    %c0_33 = arith.constant 0 : index
    %30 = vector.load %arg11[%c0_32, %c0_33] : memref<18x64xf32, #tpu.memory_space<vmem>>, vector<16x64xf32>
    %31 = arith.truncf %30 : vector<16x64xf32> to vector<16x64xbf16>
    %c0_34 = arith.constant 0 : index
    %c0_35 = arith.constant 0 : index
    %c0_36 = arith.constant 0 : index
    %32 = vector.load %arg6[%c0_34, %c0_35, %c0_36] : memref<3x64x128xbf16, #tpu.memory_space<vmem>>, vector<1x64x128xbf16>
    %33 = vector.shape_cast %32 : vector<1x64x128xbf16> to vector<64x128xbf16>
    %cst_37 = arith.constant dense<0.000000e+00> : vector<16x128xf32>
    %34 = tpu.matmul %31, %33, %cst_37 {dimension_numbers = #tpu.dot_dimension_numbers<[1], [0], [0], [1], [0, 0, 1, 1], [], []>} : vector<16x64xbf16>, vector<64x128xbf16>, vector<16x128xf32> -> vector<16x128xf32>
    %c1_38 = arith.constant 1 : index
    %c0_39 = arith.constant 0 : index
    %35 = vector.load %arg11[%c1_38, %c0_39] : memref<18x64xf32, #tpu.memory_space<vmem>>, vector<16x64xf32>
    %36 = arith.truncf %35 : vector<16x64xf32> to vector<16x64xbf16>
    %c1_40 = arith.constant 1 : index
    %c0_41 = arith.constant 0 : index
    %c0_42 = arith.constant 0 : index
    %37 = vector.load %arg6[%c1_40, %c0_41, %c0_42] : memref<3x64x128xbf16, #tpu.memory_space<vmem>>, vector<1x64x128xbf16>
    %38 = vector.shape_cast %37 : vector<1x64x128xbf16> to vector<64x128xbf16>
    %cst_43 = arith.constant dense<0.000000e+00> : vector<16x128xf32>
    %39 = tpu.matmul %36, %38, %cst_43 {dimension_numbers = #tpu.dot_dimension_numbers<[1], [0], [0], [1], [0, 0, 1, 1], [], []>} : vector<16x64xbf16>, vector<64x128xbf16>, vector<16x128xf32> -> vector<16x128xf32>
    %40 = arith.addf %34, %39 : vector<16x128xf32>
    %c2 = arith.constant 2 : index
    %c0_44 = arith.constant 0 : index
    %41 = vector.load %arg11[%c2, %c0_44] : memref<18x64xf32, #tpu.memory_space<vmem>>, vector<16x64xf32>
    %42 = arith.truncf %41 : vector<16x64xf32> to vector<16x64xbf16>
    %c2_45 = arith.constant 2 : index
    %c0_46 = arith.constant 0 : index
    %c0_47 = arith.constant 0 : index
    %43 = vector.load %arg6[%c2_45, %c0_46, %c0_47] : memref<3x64x128xbf16, #tpu.memory_space<vmem>>, vector<1x64x128xbf16>
    %44 = vector.shape_cast %43 : vector<1x64x128xbf16> to vector<64x128xbf16>
    %cst_48 = arith.constant dense<0.000000e+00> : vector<16x128xf32>
    %45 = tpu.matmul %42, %44, %cst_48 {dimension_numbers = #tpu.dot_dimension_numbers<[1], [0], [0], [1], [0, 0, 1, 1], [], []>} : vector<16x64xbf16>, vector<64x128xbf16>, vector<16x128xf32> -> vector<16x128xf32>
    %46 = arith.addf %40, %45 : vector<16x128xf32>
    %c0_49 = arith.constant 0 : index
    %c0_50 = arith.constant 0 : index
    %47 = vector.load %arg12[%c0_49, %c0_50] : memref<18x64xf32, #tpu.memory_space<vmem>>, vector<16x64xf32>
    %48 = arith.truncf %47 : vector<16x64xf32> to vector<16x64xbf16>
    %c0_51 = arith.constant 0 : index
    %c0_52 = arith.constant 0 : index
    %c0_53 = arith.constant 0 : index
    %49 = vector.load %arg7[%c0_51, %c0_52, %c0_53] : memref<3x64x128xbf16, #tpu.memory_space<vmem>>, vector<1x64x128xbf16>
    %50 = vector.shape_cast %49 : vector<1x64x128xbf16> to vector<64x128xbf16>
    %cst_54 = arith.constant dense<0.000000e+00> : vector<16x128xf32>
    %51 = tpu.matmul %48, %50, %cst_54 {dimension_numbers = #tpu.dot_dimension_numbers<[1], [0], [0], [1], [0, 0, 1, 1], [], []>} : vector<16x64xbf16>, vector<64x128xbf16>, vector<16x128xf32> -> vector<16x128xf32>
    %52 = arith.addf %46, %51 : vector<16x128xf32>
    %c1_55 = arith.constant 1 : index
    %c0_56 = arith.constant 0 : index
    %53 = vector.load %arg12[%c1_55, %c0_56] : memref<18x64xf32, #tpu.memory_space<vmem>>, vector<16x64xf32>
    %54 = arith.truncf %53 : vector<16x64xf32> to vector<16x64xbf16>
    %c1_57 = arith.constant 1 : index
    %c0_58 = arith.constant 0 : index
    %c0_59 = arith.constant 0 : index
    %55 = vector.load %arg7[%c1_57, %c0_58, %c0_59] : memref<3x64x128xbf16, #tpu.memory_space<vmem>>, vector<1x64x128xbf16>
    %56 = vector.shape_cast %55 : vector<1x64x128xbf16> to vector<64x128xbf16>
    %cst_60 = arith.constant dense<0.000000e+00> : vector<16x128xf32>
    %57 = tpu.matmul %54, %56, %cst_60 {dimension_numbers = #tpu.dot_dimension_numbers<[1], [0], [0], [1], [0, 0, 1, 1], [], []>} : vector<16x64xbf16>, vector<64x128xbf16>, vector<16x128xf32> -> vector<16x128xf32>
    %58 = arith.addf %52, %57 : vector<16x128xf32>
    %c2_61 = arith.constant 2 : index
    %c0_62 = arith.constant 0 : index
    %59 = vector.load %arg12[%c2_61, %c0_62] : memref<18x64xf32, #tpu.memory_space<vmem>>, vector<16x64xf32>
    %60 = arith.truncf %59 : vector<16x64xf32> to vector<16x64xbf16>
    %c2_63 = arith.constant 2 : index
    %c0_64 = arith.constant 0 : index
    %c0_65 = arith.constant 0 : index
    %61 = vector.load %arg7[%c2_63, %c0_64, %c0_65] : memref<3x64x128xbf16, #tpu.memory_space<vmem>>, vector<1x64x128xbf16>
    %62 = vector.shape_cast %61 : vector<1x64x128xbf16> to vector<64x128xbf16>
    %cst_66 = arith.constant dense<0.000000e+00> : vector<16x128xf32>
    %63 = tpu.matmul %60, %62, %cst_66 {dimension_numbers = #tpu.dot_dimension_numbers<[1], [0], [0], [1], [0, 0, 1, 1], [], []>} : vector<16x64xbf16>, vector<64x128xbf16>, vector<16x128xf32> -> vector<16x128xf32>
    %64 = arith.addf %58, %63 : vector<16x128xf32>
    %c0_67 = arith.constant 0 : index
    %c0_68 = arith.constant 0 : index
    %65 = vector.load %arg9[%c0_67, %c0_68] : memref<2x128xf32, #tpu.memory_space<vmem>>, vector<1x128xf32>
    %66 = vector.broadcast %65 : vector<1x128xf32> to vector<16x128xf32>
    %67 = arith.addf %64, %66 : vector<16x128xf32>
    %cst_69 = arith.constant 0.000000e+00 : f32
    %68 = vector.broadcast %cst_69 : f32 to vector<16x128xf32>
    %69 = arith.maximumf %67, %68 : vector<16x128xf32>
    %cst_70 = arith.constant 0.000000e+00 : f32
    %70 = vector.broadcast %cst_70 : f32 to vector<1x128xf32>
    %c0_71 = arith.constant 0 : index
    %c0_72 = arith.constant 0 : index
    %71 = vector.load %arg13[%c0_71, %c0_72] : memref<18x128xf32, #tpu.memory_space<vmem>>, vector<1x128xf32>
    tpu.vector_store %arg13[%c0_71, %c0_72], %70 {strides = array<i32>} : memref<18x128xf32, #tpu.memory_space<vmem>>, vector<1x128xf32>,
    %c17_73 = arith.constant 17 : index
    %c0_74 = arith.constant 0 : index
    %72 = vector.load %arg13[%c17_73, %c0_74] : memref<18x128xf32, #tpu.memory_space<vmem>>, vector<1x128xf32>
    tpu.vector_store %arg13[%c17_73, %c0_74], %70 {strides = array<i32>} : memref<18x128xf32, #tpu.memory_space<vmem>>, vector<1x128xf32>,
    %c1_75 = arith.constant 1 : index
    %c0_76 = arith.constant 0 : index
    %73 = vector.load %arg13[%c1_75, %c0_76] : memref<18x128xf32, #tpu.memory_space<vmem>>, vector<16x128xf32>
    tpu.vector_store %arg13[%c1_75, %c0_76], %69 {strides = array<i32>} : memref<18x128xf32, #tpu.memory_space<vmem>>, vector<16x128xf32>,
    %c0_77 = arith.constant 0 : index
    %c0_78 = arith.constant 0 : index
    %74 = vector.load %arg13[%c0_77, %c0_78] : memref<18x128xf32, #tpu.memory_space<vmem>>, vector<16x128xf32>
    %75 = arith.truncf %74 : vector<16x128xf32> to vector<16x128xbf16>
    %c0_79 = arith.constant 0 : index
    %c0_80 = arith.constant 0 : index
    %c0_81 = arith.constant 0 : index
    %76 = vector.load %arg8[%c0_79, %c0_80, %c0_81] : memref<3x128x128xbf16, #tpu.memory_space<vmem>>, vector<1x128x128xbf16>
    %77 = vector.shape_cast %76 : vector<1x128x128xbf16> to vector<128x128xbf16>
    %cst_82 = arith.constant dense<0.000000e+00> : vector<16x128xf32>
    %78 = tpu.matmul %75, %77, %cst_82 {dimension_numbers = #tpu.dot_dimension_numbers<[1], [0], [0], [1], [0, 0, 1, 1], [], []>} : vector<16x128xbf16>, vector<128x128xbf16>, vector<16x128xf32> -> vector<16x128xf32>
    %c1_83 = arith.constant 1 : index
    %c0_84 = arith.constant 0 : index
    %79 = vector.load %arg13[%c1_83, %c0_84] : memref<18x128xf32, #tpu.memory_space<vmem>>, vector<16x128xf32>
    %80 = arith.truncf %79 : vector<16x128xf32> to vector<16x128xbf16>
    %c1_85 = arith.constant 1 : index
    %c0_86 = arith.constant 0 : index
    %c0_87 = arith.constant 0 : index
    %81 = vector.load %arg8[%c1_85, %c0_86, %c0_87] : memref<3x128x128xbf16, #tpu.memory_space<vmem>>, vector<1x128x128xbf16>
    %82 = vector.shape_cast %81 : vector<1x128x128xbf16> to vector<128x128xbf16>
    %cst_88 = arith.constant dense<0.000000e+00> : vector<16x128xf32>
    %83 = tpu.matmul %80, %82, %cst_88 {dimension_numbers = #tpu.dot_dimension_numbers<[1], [0], [0], [1], [0, 0, 1, 1], [], []>} : vector<16x128xbf16>, vector<128x128xbf16>, vector<16x128xf32> -> vector<16x128xf32>
    %84 = arith.addf %78, %83 : vector<16x128xf32>
    %c2_89 = arith.constant 2 : index
    %c0_90 = arith.constant 0 : index
    %85 = vector.load %arg13[%c2_89, %c0_90] : memref<18x128xf32, #tpu.memory_space<vmem>>, vector<16x128xf32>
    %86 = arith.truncf %85 : vector<16x128xf32> to vector<16x128xbf16>
    %c2_91 = arith.constant 2 : index
    %c0_92 = arith.constant 0 : index
    %c0_93 = arith.constant 0 : index
    %87 = vector.load %arg8[%c2_91, %c0_92, %c0_93] : memref<3x128x128xbf16, #tpu.memory_space<vmem>>, vector<1x128x128xbf16>
    %88 = vector.shape_cast %87 : vector<1x128x128xbf16> to vector<128x128xbf16>
    %cst_94 = arith.constant dense<0.000000e+00> : vector<16x128xf32>
    %89 = tpu.matmul %86, %88, %cst_94 {dimension_numbers = #tpu.dot_dimension_numbers<[1], [0], [0], [1], [0, 0, 1, 1], [], []>} : vector<16x128xbf16>, vector<128x128xbf16>, vector<16x128xf32> -> vector<16x128xf32>
    %90 = arith.addf %84, %89 : vector<16x128xf32>
    %c1_95 = arith.constant 1 : index
    %c0_96 = arith.constant 0 : index
    %91 = vector.load %arg9[%c1_95, %c0_96] : memref<2x128xf32, #tpu.memory_space<vmem>>, vector<1x128xf32>
    %92 = vector.broadcast %91 : vector<1x128xf32> to vector<16x128xf32>
    %93 = arith.addf %90, %92 : vector<16x128xf32>
    %cst_97 = arith.constant 0.000000e+00 : f32
    %94 = vector.broadcast %cst_97 : f32 to vector<16x128xf32>
    %95 = arith.maximumf %93, %94 : vector<16x128xf32>
    %c0_98 = arith.constant 0 : index
    %c0_99 = arith.constant 0 : index
    %c0_100 = arith.constant 0 : index
    %96 = vector.load %arg10[%c0_98, %c0_99, %c0_100] : memref<1x16x128xf32, #tpu.memory_space<vmem>>, vector<1x16x128xf32>
    %97 = vector.shape_cast %96 : vector<1x16x128xf32> to vector<16x128xf32>
    %98 = vector.shape_cast %95 : vector<16x128xf32> to vector<1x16x128xf32>
    tpu.vector_store %arg10[%c0_98, %c0_99, %c0_100], %98 {strides = array<i32>} : memref<1x16x128xf32, #tpu.memory_space<vmem>>, vector<1x16x128xf32>,
    return
  }
  func.func @transform_0(%arg0: i32) -> (i32, i32, i32) {
    %c0_i32 = arith.constant 0 : i32
    %c0_i32_0 = arith.constant 0 : i32
    %c0_i32_1 = arith.constant 0 : i32
    return %arg0, %c0_i32, %c0_i32_0 : i32, i32, i32
  }
  func.func @transform_1(%arg0: i32) -> (i32, i32, i32) {
    %c0_i32 = arith.constant 0 : i32
    %c0_i32_0 = arith.constant 0 : i32
    %c0_i32_1 = arith.constant 0 : i32
    return %arg0, %c0_i32, %c0_i32_0 : i32, i32, i32
  }
  func.func @transform_2(%arg0: i32) -> (i32, i32, i32) {
    %c0_i32 = arith.constant 0 : i32
    %c0_i32_0 = arith.constant 0 : i32
    %c0_i32_1 = arith.constant 0 : i32
    %c0_i32_2 = arith.constant 0 : i32
    return %c0_i32, %c0_i32_0, %c0_i32_1 : i32, i32, i32
  }
  func.func @transform_3(%arg0: i32) -> (i32, i32, i32) {
    %c0_i32 = arith.constant 0 : i32
    %c0_i32_0 = arith.constant 0 : i32
    %c0_i32_1 = arith.constant 0 : i32
    %c0_i32_2 = arith.constant 0 : i32
    return %c0_i32, %c0_i32_0, %c0_i32_1 : i32, i32, i32
  }
  func.func @transform_4(%arg0: i32) -> (i32, i32) {
    %c0_i32 = arith.constant 0 : i32
    %c0_i32_0 = arith.constant 0 : i32
    %c0_i32_1 = arith.constant 0 : i32
    return %c0_i32, %c0_i32_0 : i32, i32
  }
  func.func @transform_5(%arg0: i32) -> (i32, i32, i32) {
    %c0_i32 = arith.constant 0 : i32
    %c0_i32_0 = arith.constant 0 : i32
    %c0_i32_1 = arith.constant 0 : i32
    %c0_i32_2 = arith.constant 0 : i32
    return %c0_i32, %c0_i32_0, %c0_i32_1 : i32, i32, i32
  }
  func.func @transform_6(%arg0: i32) -> (i32, i32, i32) {
    %c0_i32 = arith.constant 0 : i32
    %c0_i32_0 = arith.constant 0 : i32
    %c0_i32_1 = arith.constant 0 : i32
    %c0_i32_2 = arith.constant 0 : i32
    return %c0_i32, %c0_i32_0, %c0_i32_1 : i32, i32, i32
  }
  func.func @transform_7(%arg0: i32) -> (i32, i32, i32) {
    %c0_i32 = arith.constant 0 : i32
    %c0_i32_0 = arith.constant 0 : i32
    %c0_i32_1 = arith.constant 0 : i32
    %c0_i32_2 = arith.constant 0 : i32
    return %c0_i32, %c0_i32_0, %c0_i32_1 : i32, i32, i32
  }
  func.func @transform_8(%arg0: i32) -> (i32, i32) {
    %c0_i32 = arith.constant 0 : i32
    %c0_i32_0 = arith.constant 0 : i32
    %c0_i32_1 = arith.constant 0 : i32
    return %c0_i32, %c0_i32_0 : i32, i32
  }
  func.func @transform_9(%arg0: i32) -> (i32, i32, i32) {
    %c0_i32 = arith.constant 0 : i32
    %c0_i32_0 = arith.constant 0 : i32
    %c0_i32_1 = arith.constant 0 : i32
    return %arg0, %c0_i32, %c0_i32_0 : i32, i32, i32
  }
}

</mosaic_0001>

<bundles_post_ra>
// kernel: tile.23
= control target key start
LH: loop header
LB: loop body
LE: loop exit
PB: predicated region body
PF: predicated region fallthrough
CT: control target
= control target key end

     0   :  { %s28_s0 = inlined_call_operand.vmem [shape: f32[8], index: 0, kind: input, shape index: {}]   ;;  %s29_s1 = inlined_call_operand.vmem [shape: f32[16,8], index: 1, kind: output, shape index: {}]  }
   0x1   :  { %v4_v0 = vld [vmem:[%s28_s0] ss:$0 sm:$0xff] }
   0x2   :  { %5 = vst [vmem:[%s29_s1] sm:$0xff] %v4_v0  ;;  %8 = vst [vmem:[%s29_s1 + $0x8] sm:$0xff] %v4_v0 }

// kernel: tile.28
= control target key start
LH: loop header
LB: loop body
LE: loop exit
PB: predicated region body
PF: predicated region fallthrough
CT: control target
= control target key end

     0   :  { %s133_s10 = smov 120   ;;  %s134_s11 = smov 104   ;;  %vm3_vm0 = vcmask 64512   ;;  %vm9_vm1 = vcmask 1048512   ;;  %vm15_vm2 = vcmask 982912   ;;  %vm21_vm3 = vcmask 917312   ;;  %s209_s0 = inlined_call_operand.vmem [shape: f32[16,8], index: 0, kind: input, shape index: {}]   ;;  %s210_s1 = inlined_call_operand.vmem [shape: f32[1,128], index: 1, kind: output, shape index: {}]  }
   0x1   :  { %v103_v0 = vld [vmem:[%s209_s0 + $0xf] sm:$0x1]   ;;  %v105_v1 = vld [vmem:[%s209_s0 + $0xd] sm:$0x1]   ;;  %v104_v2 = vld [vmem:[%s209_s0 + $0xe] sm:$0x1]  }
   0x2   :  { %7 = vrot.lane.b32.xlu0 %v103_v0, %s133_s10  ;;  %19 = vrot.lane.b32.xlu1 %v105_v1, %s134_s11  ;;  %v106_v3 = vld [vmem:[%s209_s0 + $0xc] sm:$0x1]   ;;  %s135_s16 = smov 112   ;;  %s136_s17 = smov 96   ;;  %v107_v4 = vld [vmem:[%s209_s0 + $0xb] sm:$0x1]  }
   0x3   :  { %v108_v5 = vld [vmem:[%s209_s0 + $0xa] sm:$0x1]   ;;  %v2_v6 = vld [vmem:[%s209_s0] sm:$0x1]   ;;  %s137_s24 = smov 88   ;;  %s138_s25 = smov 80  }
   0x4   :  { %4 = vst.msk [vmem:[#allocation0] sm:$0x1] %vm3_vm0, %v2_v6   ;;  %v109_v7 = vld [vmem:[%s209_s0 + $0x9] sm:$0x1]   ;;  %v110_v8 = vld [vmem:[%s209_s0 + $0x8] sm:$0x1]  }
   0x5   :  { %s139_s30 = smov 72   ;;  %s140_s2 = smov 64   ;;  %v111_v9 = vld [vmem:[%s209_s0 + $0x7] sm:$0x1]   ;;  %v112_v10 = vld [vmem:[%s209_s0 + $0x6] sm:$0x1]  }
   0x6   :  { %13 = vrot.lane.b32.xlu0 %v104_v2, %s135_s16  ;;  %25 = vrot.lane.b32.xlu1 %v106_v3, %s136_s17  ;;  %s141_s7 = smov 56   ;;  %s142_s8 = smov 48   ;;  %v113_v11 = vld [vmem:[%s209_s0 + $0x5] sm:$0x1]   ;;  %v114_v12 = vld [vmem:[%s209_s0 + $0x4] sm:$0x1]  }
   0x7   :  { %s143_s13 = smov 40   ;;  %s144_s14 = smov 32   ;;  %v115_v13 = vld [vmem:[%s209_s0 + $0x3] sm:$0x1]   ;;  %v116_v14 = vld [vmem:[%s209_s0 + $0x2] sm:$0x1]  }
   0x8   :  { %s145_s19 = smov 24   ;;  %s146_s20 = smov 16   ;;  %v117_v15 = vld [vmem:[%s209_s0 + $0x1] sm:$0x1]   ;;  %vm27_vm4 = vcmask 851712   ;;  %vm33_vm5 = vcmask 786112  }
   0x9   :  { %s147_s0 = smov 8   ;;  %vm39_vm6 = vcmask 720512   ;;  %vm45_vm7 = vcmask 654912   ;;  %vm51_vm8 = vcmask 589312   ;;  %vm57_vm9 = vcmask 523712  }
   0xa   :  { %31 = vrot.lane.b32.xlu0 %v107_v4, %s137_s24  ;;  %37 = vrot.lane.b32.xlu1 %v108_v5, %s138_s25  ;;  %vm63_vm10 = vcmask 458112   ;;  %vm69_vm11 = vcmask 392512   ;;  %vm75_vm12 = vcmask 326912   ;;  %vm81_vm13 = vcmask 261312  }
   0xb   :  { %vm87_vm14 = vcmask 195712   ;;  %vm93_vm15 = vcmask 130112  }
   0xe   :  { %43 = vrot.lane.b32.xlu0 %v109_v7, %s139_s30  ;;  %49 = vrot.lane.b32.xlu1 %v110_v8, %s140_s2 }
  0x12   :  { %55 = vrot.lane.b32.xlu0 %v111_v9, %s141_s7  ;;  %61 = vrot.lane.b32.xlu1 %v112_v10, %s142_s8 }
  0x16   :  { %67 = vrot.lane.b32.xlu0 %v113_v11, %s143_s13  ;;  %73 = vrot.lane.b32.xlu1 %v114_v12, %s144_s14 }
  0x1a   :  { %79 = vrot.lane.b32.xlu0 %v115_v13, %s145_s19  ;;  %85 = vrot.lane.b32.xlu1 %v116_v14, %s146_s20 }
  0x1e   :  { %91 = vrot.lane.b32.xlu0 %v117_v15, %s147_s0 }
  0x74   :  { %v8_v16 = vpop.permute.xlu0 %7   ;;  %v20_v17 = vpop.permute.xlu1 %19  }
  0x75   :  { %10 = vst.msk [vmem:[#allocation0] sm:$0x1] %vm9_vm1, %v8_v16  }
  0x78   :  { %v14_v18 = vpop.permute.xlu0 %13   ;;  %v26_v19 = vpop.permute.xlu1 %25  }
  0x79   :  { %16 = vst.msk [vmem:[#allocation0] sm:$0x1] %vm15_vm2, %v14_v18  }
  0x7a   :  { %22 = vst.msk [vmem:[#allocation0] sm:$0x1] %vm21_vm3, %v20_v17  }
  0x7b   :  { %28 = vst.msk [vmem:[#allocation0] sm:$0x1] %vm27_vm4, %v26_v19  }
  0x7c   :  { %v32_v20 = vpop.permute.xlu0 %31   ;;  %v38_v21 = vpop.permute.xlu1 %37  }
  0x7d   :  { %34 = vst.msk [vmem:[#allocation0] sm:$0x1] %vm33_vm5, %v32_v20  }
  0x7e   :  { %40 = vst.msk [vmem:[#allocation0] sm:$0x1] %vm39_vm6, %v38_v21  }
  0x80   :  { %v44_v22 = vpop.permute.xlu0 %43   ;;  %v50_v23 = vpop.permute.xlu1 %49  }
  0x81   :  { %46 = vst.msk [vmem:[#allocation0] sm:$0x1] %vm45_vm7, %v44_v22  }
  0x82   :  { %52 = vst.msk [vmem:[#allocation0] sm:$0x1] %vm51_vm8, %v50_v23  }
  0x84   :  { %v56_v24 = vpop.permute.xlu0 %55   ;;  %v62_v25 = vpop.permute.xlu1 %61  }
  0x85   :  { %58 = vst.msk [vmem:[#allocation0] sm:$0x1] %vm57_vm9, %v56_v24  }
  0x86   :  { %64 = vst.msk [vmem:[#allocation0] sm:$0x1] %vm63_vm10, %v62_v25  }
  0x88   :  { %v68_v26 = vpop.permute.xlu0 %67   ;;  %v74_v27 = vpop.permute.xlu1 %73  }
  0x89   :  { %70 = vst.msk [vmem:[#allocation0] sm:$0x1] %vm69_vm11, %v68_v26  }
  0x8a   :  { %76 = vst.msk [vmem:[#allocation0] sm:$0x1] %vm75_vm12, %v74_v27  }
  0x8c   :  { %v80_v28 = vpop.permute.xlu0 %79   ;;  %v86_v29 = vpop.permute.xlu1 %85  }
  0x8d   :  { %82 = vst.msk [vmem:[#allocation0] sm:$0x1] %vm81_vm13, %v80_v28  }
  0x8e   :  { %88 = vst.msk [vmem:[#allocation0] sm:$0x1] %vm87_vm14, %v86_v29  }
  0x90   :  { %v92_v30 = vpop.permute.xlu0 %91  }
  0x91   :  { %94 = vst.msk [vmem:[#allocation0] sm:$0x1] %vm93_vm15, %v92_v30  }
  0x98   :  { %v99_v31 = vld [vmem:[#allocation0] sm:$0x1] }
  0x99   :  { %102 = vst [vmem:[%s210_s1] sm:$0x1] %v99_v31 }

// kernel: tile.18
= control target key start
LH: loop header
LB: loop body
LE: loop exit
PB: predicated region body
PF: predicated region fallthrough
CT: control target
= control target key end

     0   :  { %s28_s0 = inlined_call_operand.vmem [shape: f32[4], index: 0, kind: input, shape index: {}]   ;;  %s29_s1 = inlined_call_operand.vmem [shape: f32[16,4], index: 1, kind: output, shape index: {}]  }
   0x1   :  { %v4_v0 = vld [vmem:[%s28_s0] ss:$0 sm:$0xff] }
   0x2   :  { %5 = vst [vmem:[%s29_s1] sm:$0xff] %v4_v0  ;;  %8 = vst [vmem:[%s29_s1 + $0x8] sm:$0xff] %v4_v0 }

// kernel: tile.19
= control target key start
LH: loop header
LB: loop body
LE: loop exit
PB: predicated region body
PF: predicated region fallthrough
CT: control target
= control target key end

     0   :  { %s133_s10 = smov 60   ;;  %s134_s11 = smov 52   ;;  %vm3_vm0 = vcmask 31744   ;;  %vm9_vm1 = vcmask 523744   ;;  %vm15_vm2 = vcmask 490944   ;;  %vm21_vm3 = vcmask 458144   ;;  %s209_s0 = inlined_call_operand.vmem [shape: f32[16,4], index: 0, kind: input, shape index: {}]   ;;  %s210_s1 = inlined_call_operand.vmem [shape: f32[1,64], index: 1, kind: output, shape index: {}]  }
   0x1   :  { %v103_v0 = vld [vmem:[%s209_s0 + $0xf] sm:$0x1]   ;;  %v105_v1 = vld [vmem:[%s209_s0 + $0xd] sm:$0x1]   ;;  %v104_v2 = vld [vmem:[%s209_s0 + $0xe] sm:$0x1]  }
   0x2   :  { %7 = vrot.lane.b32.xlu0 %v103_v0, %s133_s10  ;;  %19 = vrot.lane.b32.xlu1 %v105_v1, %s134_s11  ;;  %v106_v3 = vld [vmem:[%s209_s0 + $0xc] sm:$0x1]   ;;  %s135_s16 = smov 56   ;;  %s136_s17 = smov 48   ;;  %v107_v4 = vld [vmem:[%s209_s0 + $0xb] sm:$0x1]  }
   0x3   :  { %v108_v5 = vld [vmem:[%s209_s0 + $0xa] sm:$0x1]   ;;  %v2_v6 = vld [vmem:[%s209_s0] sm:$0x1]   ;;  %s137_s24 = smov 44   ;;  %s138_s25 = smov 40  }
   0x4   :  { %4 = vst.msk [vmem:[#allocation0] sm:$0x1] %vm3_vm0, %v2_v6   ;;  %v109_v7 = vld [vmem:[%s209_s0 + $0x9] sm:$0x1]   ;;  %v110_v8 = vld [vmem:[%s209_s0 + $0x8] sm:$0x1]  }
   0x5   :  { %s139_s30 = smov 36   ;;  %s140_s2 = smov 32   ;;  %v111_v9 = vld [vmem:[%s209_s0 + $0x7] sm:$0x1]   ;;  %v112_v10 = vld [vmem:[%s209_s0 + $0x6] sm:$0x1]  }
   0x6   :  { %13 = vrot.lane.b32.xlu0 %v104_v2, %s135_s16  ;;  %25 = vrot.lane.b32.xlu1 %v106_v3, %s136_s17  ;;  %s141_s7 = smov 28   ;;  %s142_s8 = smov 24   ;;  %v113_v11 = vld [vmem:[%s209_s0 + $0x5] sm:$0x1]   ;;  %v114_v12 = vld [vmem:[%s209_s0 + $0x4] sm:$0x1]  }
   0x7   :  { %s143_s13 = smov 20   ;;  %s144_s14 = smov 16   ;;  %v115_v13 = vld [vmem:[%s209_s0 + $0x3] sm:$0x1]   ;;  %v116_v14 = vld [vmem:[%s209_s0 + $0x2] sm:$0x1]  }
   0x8   :  { %s145_s19 = smov 12   ;;  %s146_s20 = smov 8   ;;  %v117_v15 = vld [vmem:[%s209_s0 + $0x1] sm:$0x1]   ;;  %vm27_vm4 = vcmask 425344   ;;  %vm33_vm5 = vcmask 392544  }
   0x9   :  { %s147_s0 = smov 4   ;;  %vm39_vm6 = vcmask 359744   ;;  %vm45_vm7 = vcmask 326944   ;;  %vm51_vm8 = vcmask 294144   ;;  %vm57_vm9 = vcmask 261344  }
   0xa   :  { %31 = vrot.lane.b32.xlu0 %v107_v4, %s137_s24  ;;  %37 = vrot.lane.b32.xlu1 %v108_v5, %s138_s25  ;;  %vm63_vm10 = vcmask 228544   ;;  %vm69_vm11 = vcmask 195744   ;;  %vm75_vm12 = vcmask 162944   ;;  %vm81_vm13 = vcmask 130144  }
   0xb   :  { %vm87_vm14 = vcmask 97344   ;;  %vm93_vm15 = vcmask 64544  }
   0xe   :  { %43 = vrot.lane.b32.xlu0 %v109_v7, %s139_s30  ;;  %49 = vrot.lane.b32.xlu1 %v110_v8, %s140_s2 }
  0x12   :  { %55 = vrot.lane.b32.xlu0 %v111_v9, %s141_s7  ;;  %61 = vrot.lane.b32.xlu1 %v112_v10, %s142_s8 }
  0x16   :  { %67 = vrot.lane.b32.xlu0 %v113_v11, %s143_s13  ;;  %73 = vrot.lane.b32.xlu1 %v114_v12, %s144_s14 }
  0x1a   :  { %79 = vrot.lane.b32.xlu0 %v115_v13, %s145_s19  ;;  %85 = vrot.lane.b32.xlu1 %v116_v14, %s146_s20 }
  0x1e   :  { %91 = vrot.lane.b32.xlu0 %v117_v15, %s147_s0 }
  0x74   :  { %v8_v16 = vpop.permute.xlu0 %7   ;;  %v20_v17 = vpop.permute.xlu1 %19  }
  0x75   :  { %10 = vst.msk [vmem:[#allocation0] sm:$0x1] %vm9_vm1, %v8_v16  }
  0x78   :  { %v14_v18 = vpop.permute.xlu0 %13   ;;  %v26_v19 = vpop.permute.xlu1 %25  }
  0x79   :  { %16 = vst.msk [vmem:[#allocation0] sm:$0x1] %vm15_vm2, %v14_v18  }
  0x7a   :  { %22 = vst.msk [vmem:[#allocation0] sm:$0x1] %vm21_vm3, %v20_v17  }
  0x7b   :  { %28 = vst.msk [vmem:[#allocation0] sm:$0x1] %vm27_vm4, %v26_v19  }
  0x7c   :  { %v32_v20 = vpop.permute.xlu0 %31   ;;  %v38_v21 = vpop.permute.xlu1 %37  }
  0x7d   :  { %34 = vst.msk [vmem:[#allocation0] sm:$0x1] %vm33_vm5, %v32_v20  }
  0x7e   :  { %40 = vst.msk [vmem:[#allocation0] sm:$0x1] %vm39_vm6, %v38_v21  }
  0x80   :  { %v44_v22 = vpop.permute.xlu0 %43   ;;  %v50_v23 = vpop.permute.xlu1 %49  }
  0x81   :  { %46 = vst.msk [vmem:[#allocation0] sm:$0x1] %vm45_vm7, %v44_v22  }
  0x82   :  { %52 = vst.msk [vmem:[#allocation0] sm:$0x1] %vm51_vm8, %v50_v23  }
  0x84   :  { %v56_v24 = vpop.permute.xlu0 %55   ;;  %v62_v25 = vpop.permute.xlu1 %61  }
  0x85   :  { %58 = vst.msk [vmem:[#allocation0] sm:$0x1] %vm57_vm9, %v56_v24  }
  0x86   :  { %64 = vst.msk [vmem:[#allocation0] sm:$0x1] %vm63_vm10, %v62_v25  }
  0x88   :  { %v68_v26 = vpop.permute.xlu0 %67   ;;  %v74_v27 = vpop.permute.xlu1 %73  }
  0x89   :  { %70 = vst.msk [vmem:[#allocation0] sm:$0x1] %vm69_vm11, %v68_v26  }
  0x8a   :  { %76 = vst.msk [vmem:[#allocation0] sm:$0x1] %vm75_vm12, %v74_v27  }
  0x8c   :  { %v80_v28 = vpop.permute.xlu0 %79   ;;  %v86_v29 = vpop.permute.xlu1 %85  }
  0x8d   :  { %82 = vst.msk [vmem:[#allocation0] sm:$0x1] %vm81_vm13, %v80_v28  }
  0x8e   :  { %88 = vst.msk [vmem:[#allocation0] sm:$0x1] %vm87_vm14, %v86_v29  }
  0x90   :  { %v92_v30 = vpop.permute.xlu0 %91  }
  0x91   :  { %94 = vst.msk [vmem:[#allocation0] sm:$0x1] %vm93_vm15, %v92_v30  }
  0x98   :  { %v99_v31 = vld [vmem:[#allocation0] sm:$0x1] }
  0x99   :  { %102 = vst [vmem:[%s210_s1] sm:$0x1] %v99_v31 }

// kernel: upncbr_forward.1
= control target key start
LH: loop header
LB: loop body
LE: loop exit
PB: predicated region body
PF: predicated region fallthrough
CT: control target
= control target key end

     0   :  { %s2068_s30 = smov 0   ;;  %s2388_s0 = inlined_call_operand.vmem [shape: f32[2,8,64], index: 0, kind: input, shape index: {}]   ;;  %s2389_s1 = inlined_call_operand.vmem [shape: f32[2,16,64], index: 1, kind: input, shape index: {}]   ;;  %s2390_s2 = inlined_call_operand.vmem [shape: bf16[2,64,64], index: 2, kind: input, shape index: {}]   ;;  %s2391_s3 = inlined_call_operand.vmem [shape: bf16[2,16,8], index: 3, kind: input, shape index: {}]   ;;  %s2392_s4 = inlined_call_operand.vmem [shape: f32[1,64], index: 4, kind: input, shape index: {}]   ;;  %s2393_s5 = inlined_call_operand.vmem [shape: bf16[3,64,128], index: 5, kind: input, shape index: {}]   ;;  %s2394_s6 = inlined_call_operand.vmem [shape: bf16[3,64,128], index: 6, kind: input, shape index: {}]   ;;  %s2395_s7 = inlined_call_operand.vmem [shape: bf16[3,128,128], index: 7, kind: input, shape index: {}]   ;;  %s2396_s8 = inlined_call_operand.vmem [shape: f32[2,128], index: 8, kind: input, shape index: {}]   ;;  %s2397_s9 = inlined_call_operand.vmem [shape: f32[2,16,128], index: 9, kind: output, shape index: {}]  }
   0x1 LB: > { %s1542_s10 = sadd.s32 4294967295, %s2014_s30   ;;  %p1546_p0 = scmp.ge.s32.totalorder %s2014_s30, 1  ;;  %s2014_s30 = sphi %s2068_s30, %s19_s30  }
   0x2   : > { %p296_p1 = scmp.lt.s32.totalorder %s2014_s30, 3 }
   0x4   : > { %p297_p2 = pnand %p1546_p0, %p296_p1 }
   0x5   : > { %p336_p3 = scmp.lt.s32.totalorder (!%p297_p2), %s1542_s10, 1 }
   0x6   : > { %300 = sbr.rel (%p297_p2) target bundleno = 911 (0x38f), region = 56 }
   0xb   : > { %v1950_v0 = vld [vmem:[%s2390_s2 + $0x18] sm:$0xff]   ;;  %v2016_v1 = vmov 0.0   ;;  %v1951_v2 = vld [vmem:[%s2390_s2 + $0x10] sm:$0xff]   ;;  %vm2017_vm0 = vmmov 0   ;;  %vm385_vm1 = vcmask 523264   ;;  %s2399_s10 = smov (!%p336_p3, %s1542_s10), 1 }
   0xc   : > { %1772 = vmatprep.subr.bf16.mxu1 %v2016_v1  ;;  %1132 = vst [vmem:[#allocation4] sm:$0x1] %v2016_v1  ;;  %1133 = vst [vmem:[#allocation4 + $0x11] sm:$0x1] %v2016_v1  ;;  %1796 = vmatprep.subr.bf16.mxu0 %v2016_v1  ;;  %v1952_v3 = vld [vmem:[%s2390_s2 + $0x8] sm:$0xff]   ;;  %s1547_s17 = sshll.u32 %s2399_s10, 3 }
   0xd   : > { %1773 = vmatpush3.bf16.msra.mxu1 %v1950_v0  ;;  %1780 = vmatprep.mubr.msk.bf16.mxu1 %vm2017_vm0, %v2016_v1  ;;  %631 = vst.msk [vmem:[#allocation3] sm:$0xff] %vm385_vm1, %v2016_v1  ;;  %632 = vst.msk [vmem:[#allocation3 + $0x8] sm:$0xff] %vm385_vm1, %v2016_v1  ;;  %s1699_s18 = sshll.u32 %s2399_s10, 4  ;;  %s339_s21 = scalar_lea.vmem %s2388_s0, %s1547_s17  ;;  %v1953_v4 = vld [vmem:[%s2390_s2] sm:$0xff]   ;;  %v1954_v8 = vld [vmem:[%s2390_s2 + $0x38] sm:$0xff]   ;;  %vm518_vm2 = vcmask 1043456  }
   0xe   : > { %1774 = vmatprep.subr.bf16.mxu1 %v2016_v1  ;;  %1798 = vmatprep.mubr.msk.bf16.mxu0 %vm2017_vm0, %v2016_v1  ;;  %s344_s24 = scalar_lea.vmem %s2389_s1, %s1699_s18  ;;  %v351_v7 = vld [vmem:[%s339_s21] sm:$0xff]  ;;  %v1955_v10 = vld [vmem:[%s2390_s2 + $0x30] sm:$0xff]   ;;  %v1956_v11 = vld [vmem:[%s2390_s2 + $0x28] sm:$0xff]   ;;  %vm514_vm3 = vcmask 64512   ;;  %vm624_vm4 = vcmask 516096   ;;  %vm633_vm5 = vcmask 517120   ;;  %s349_s16 = scalar_lea.vmem %s2397_s9, %s1699_s18 }
   0xf   : > { %v627_v5 = vld [vmem:[%s344_s24] sm:$0xff]  ;;  %v628_v6 = vld [vmem:[%s344_s24 + $0x8] sm:$0xff]  ;;  %v352_v9 = vpack.c.bf16 %v351_v7, %v351_v7  ;;  %v1964_v19 = vld [vmem:[%s2393_s5 + $0x18] sm:$0xff]   ;;  %625 = vst.msk [vmem:[#allocation2] sm:$0x1] %vm624_vm4, %v2016_v1 }
  0x10   : > { %629 = vst.msk [vmem:[#allocation2 + $0x1] sm:$0xff] %vm385_vm1, %v627_v5  ;;  %630 = vst.msk [vmem:[#allocation2 + $0x9] sm:$0xff] %vm385_vm1, %v628_v6  ;;  %v1957_v12 = vld [vmem:[%s2390_s2 + $0x20] sm:$0xff]   ;;  %v1966_v21 = vld [vmem:[%s2393_s5 + $0x10] sm:$0xff]  }
  0x11   : > { %1775 = vmatpush3.bf16.msra.mxu1 %v1951_v2  ;;  %v1958_v17 = vld [vmem:[%s2391_s3] sm:$0xff]   ;;  %v1968_v22 = vld [vmem:[%s2393_s5 + $0x8] sm:$0xff]   ;;  %v1960_v29 = vld [vmem:[%s2393_s5 + $0x38] sm:$0xff]   ;;  %626 = vst.msk [vmem:[#allocation2 + $0x11] sm:$0x1] %vm624_vm4, %v2016_v1 }
  0x12   : > { %1776 = vmatprep.subr.bf16.mxu1 %v2016_v1  ;;  %v1959_v27 = vld [vmem:[%s2391_s3 + $0x8] sm:$0xff]   ;;  %v1961_v31 = vld [vmem:[%s2393_s5 + $0x30] sm:$0xff]   ;;  %v1963_v33 = vld [vmem:[%s2393_s5 + $0x20] sm:$0xff]   ;;  %634 = vst.msk [vmem:[#allocation3 + $0x10] sm:$0x3] %vm633_vm5, %v2016_v1 }
  0x13   : > { %v1962_v32 = vld [vmem:[%s2393_s5 + $0x28] sm:$0xff]   ;;  %v1965_v37 = vld [vmem:[%s2393_s5 + $0x58] sm:$0xff]   ;;  %v1967_v38 = vld [vmem:[%s2393_s5 + $0x50] sm:$0xff]  }
  0x14   : > { %v1969_v39 = vld [vmem:[%s2393_s5 + $0x48] sm:$0xff]   ;;  %v1970_v40 = vld [vmem:[%s2393_s5] sm:$0xff]   ;;  %v1972_v48 = vld [vmem:[%s2394_s6 + $0x18] sm:$0xff]  }
  0x15   : > { %1777 = vmatpush3.bf16.msra.mxu1 %v1952_v3  ;;  %v1971_v41 = vld [vmem:[%s2393_s5 + $0x40] sm:$0xff]   ;;  %v1973_v49 = vld [vmem:[%s2394_s6 + $0x38] sm:$0xff]   ;;  %v1974_v50 = vld [vmem:[%s2394_s6 + $0x10] sm:$0xff]  }
  0x16   : > { %1778 = vmatprep.subr.bf16.mxu1 %v2016_v1  ;;  %v1975_v51 = vld [vmem:[%s2394_s6 + $0x30] sm:$0xff]   ;;  %v1976_v52 = vld [vmem:[%s2394_s6 + $0x8] sm:$0xff]   ;;  %v1978_v54 = vld [vmem:[%s2394_s6] sm:$0xff]  }
  0x17   : > { %v648_v34 = vld [vmem:[#allocation2 + $0x1] sm:$0xff]  ;;  %v649_v35 = vld [vmem:[#allocation2 + $0x9] sm:$0xff]  ;;  %v1576_v61 = vld [vmem:[%s2392_s4] ss:$0 sm:$0xff] }
  0x18   : > { %v650_v36 = vpack.c.bf16 %v649_v35, %v648_v34  ;;  %v638_v42 = vld [vmem:[#allocation2 + $0x8] sm:$0xff]  ;;  %v637_v44 = vld [vmem:[#allocation2] sm:$0xff]  ;;  %v1980_v7 = vld [vmem:[%s2394_s6 + $0x58] sm:$0xff]  }
  0x19   : > { %1779 = vmatpush3.bf16.msra.mxu1 %v1953_v4  ;;  %v796_v43 = vld [vmem:[#allocation2 + $0x2] sm:$0xff]  ;;  %v797_v45 = vld [vmem:[#allocation2 + $0xa] sm:$0xff]  ;;  %v639_v46 = vpack.c.bf16 %v638_v42, %v637_v44  ;;  %v1984_v35 = vld [vmem:[%s2395_s7 + $0x78] sm:$0xff]  }
  0x1a   : > { %1784 = vmatprep.subr.bf16.mxu1 %v2016_v1  ;;  %v798_v47 = vpack.c.bf16 %v797_v45, %v796_v43  ;;  %v1977_v53 = vld [vmem:[%s2394_s6 + $0x28] sm:$0xff]   ;;  %v1979_v55 = vld [vmem:[%s2394_s6 + $0x20] sm:$0xff]   ;;  %v1992_v42 = vld [vmem:[%s2395_s7 + $0x58] sm:$0xff]  }
  0x1b   : > { %v1994_v43 = vld [vmem:[%s2395_s7 + $0x50] sm:$0xff]   ;;  %v1991_v44 = vld [vmem:[%s2395_s7 + $0x20] sm:$0xff]   ;;  %v1996_v45 = vld [vmem:[%s2395_s7 + $0x48] sm:$0xff]  }
  0x1c   : > { %1781 = vmatmul.mubr.msk.bf16.vlgmr.msra.gmra.mxu1 %vm385_vm1, %v352_v9 }
  0x1d   : > { %1785 = vmatpush3.bf16.msra.mxu1 %v1954_v8  ;;  %1792 = vmatprep.mubr.msk.bf16.mxu1 %vm2017_vm0, %v2016_v1 }
  0x1e   : > { %1786 = vmatprep.subr.bf16.mxu1 %v2016_v1 }
  0x21   : > { %1787 = vmatpush3.bf16.msra.mxu1 %v1955_v10 }
  0x22   : > { %1788 = vmatprep.subr.bf16.mxu1 %v2016_v1 }
  0x25   : > { %1789 = vmatpush3.bf16.msra.mxu1 %v1956_v11 }
  0x26   : > { %1790 = vmatprep.subr.bf16.mxu1 %v2016_v1 }
  0x29   : > { %1791 = vmatpush3.bf16.msra.mxu1 %v1957_v12 }
  0x2a   : > { %1802 = vmatprep.subr.bf16.mxu1 %v2016_v1 }
  0x2c   : > { %1793 = vmatmul.mubr.msk.bf16.vlgmr.msra.gmra.mxu1 %vm385_vm1, %v352_v9 }
  0x2d   : > { %1804 = vmatprep.mubr.msk.bf16.mxu1 %vm2017_vm0, %v2016_v1 }
  0xdc   : > { %v423_v13 = vpop.f32.mrf.mxu1 }
  0xdd   : > { %v429_v14 = vpack.c.bf16 %v423_v13, %v423_v13 }
  0xde   : > { %v1782_v15 = vpop.f32.mrf.mxu1 }
  0xdf   : > { %v572_v16 = vsel %vm518_vm2, %v429_v14, 0  ;;  %v1981_v15 = vld [vmem:[%s2394_s6 + $0x50] sm:$0xff]  }
  0xe0   : > { %v426_v18 = vpop.f32.mrf.mxu1  ;;  %1803 = vmatpush3.bf16.msra.mxu1 %v572_v16 }
  0xe1   : > { %1820 = vmatprep.subr.bf16.mxu1 %v2016_v1  ;;  %v1982_v18 = vld [vmem:[%s2394_s6 + $0x48] sm:$0xff]  }
  0xe2   : > { %v1783_v20 = vpop.f32.mrf.mxu1 }
  0xe3   : > { %1805 = vmatmul.mubr.msk.bf16.vlgmr.msra.gmra.mxu1 %vm514_vm3, %v1958_v17 }
  0xe4   : > { %1821 = vmatpush3.bf16.msra.mxu1 %v1964_v19  ;;  %1828 = vmatprep.mubr.msk.bf16.mxu1 %vm2017_vm0, %v2016_v1  ;;  %v1983_v19 = vld [vmem:[%s2394_s6 + $0x40] sm:$0xff]  }
  0xe5   : > { %1822 = vmatprep.subr.bf16.mxu1 %v2016_v1 }
  0xe8   : > { %1823 = vmatpush3.bf16.msra.mxu1 %v1966_v21 }
  0xe9   : > { %1824 = vmatprep.subr.bf16.mxu1 %v2016_v1 }
  0xec   : > { %v497_v23 = vpop.f32.mrf.mxu1  ;;  %1825 = vmatpush3.bf16.msra.mxu1 %v1968_v22 }
  0xed   : > { %v503_v24 = vpack.c.bf16 %v497_v23, %v497_v23  ;;  %1826 = vmatprep.subr.bf16.mxu1 %v2016_v1 }
  0xee   : > { %v1794_v25 = vpop.f32.mrf.mxu1 }
  0xef   : > { %v520_v26 = vsel %vm518_vm2, %v503_v24, 0 }
  0xf0   : > { %v500_v28 = vpop.f32.mrf.mxu1  ;;  %1797 = vmatpush3.bf16.msra.mxu0 %v520_v26  ;;  %1827 = vmatpush3.bf16.msra.mxu1 %v1970_v40  ;;  %v1990_v40 = vld [vmem:[%s2395_s7 + $0x60] sm:$0xff]  }
  0xf1   : > { %1808 = vmatprep.subr.bf16.mxu0 %v2016_v1  ;;  %1844 = vmatprep.subr.bf16.mxu1 %v2016_v1 }
  0xf2   : > { %v1795_v30 = vpop.f32.mrf.mxu1 }
  0xf3   : > { %1799 = vmatmul.mubr.msk.bf16.vlgmr.msra.gmra.mxu0 %vm514_vm3, %v1959_v27  ;;  %1829 = vmatmul.mubr.msk.bf16.vlgmr.msra.gmra.mxu1 %vm385_vm1, %v639_v46  ;;  %v1993_v46 = vld [vmem:[%s2395_s7 + $0x18] sm:$0xff]  }
  0xf4   : > { %1809 = vmatpush3.bf16.msra.mxu0 %v1960_v29  ;;  %1816 = vmatprep.mubr.msk.bf16.mxu0 %vm2017_vm0, %v2016_v1 }
  0xf5   : > { %1810 = vmatprep.subr.bf16.mxu0 %v2016_v1  ;;  %1852 = vmatprep.mubr.msk.bf16.mxu1 %vm2017_vm0, %v2016_v1 }
  0xf6   : > { %1845 = vmatpush3.bf16.msra.mxu1 %v1972_v48  ;;  %v1995_v48 = vld [vmem:[%s2395_s7 + $0x10] sm:$0xff]  }
  0xf7   : > { %1846 = vmatprep.subr.bf16.mxu1 %v2016_v1 }
  0xf8   : > { %1811 = vmatpush3.bf16.msra.mxu0 %v1961_v31 }
  0xf9   : > { %1812 = vmatprep.subr.bf16.mxu0 %v2016_v1 }
  0xfa   : > { %1847 = vmatpush3.bf16.msra.mxu1 %v1974_v50  ;;  %v1999_v50 = vld [vmem:[%s2395_s7] sm:$0xff]  }
  0xfb   : > { %1848 = vmatprep.subr.bf16.mxu1 %v2016_v1 }
  0xfc   : > { %1813 = vmatpush3.bf16.msra.mxu0 %v1962_v32 }
  0xfd   : > { %1814 = vmatprep.subr.bf16.mxu0 %v2016_v1 }
  0xfe   : > { %1849 = vmatpush3.bf16.msra.mxu1 %v1976_v52 }
  0xff   : > { %1850 = vmatprep.subr.bf16.mxu1 %v2016_v1 }
 0x100   : > { %1815 = vmatpush3.bf16.msra.mxu0 %v1963_v33 }
 0x101   : > { %1832 = vmatprep.subr.bf16.mxu0 %v2016_v1 }
 0x102   : > { %1851 = vmatpush3.bf16.msra.mxu1 %v1978_v54 }
 0x103   : > { %1817 = vmatmul.mubr.msk.bf16.vlgmr.msra.gmra.mxu0 %vm385_vm1, %v650_v36  ;;  %1868 = vmatprep.subr.bf16.mxu1 %v2016_v1  ;;  %v1986_v36 = vld [vmem:[%s2395_s7 + $0x70] sm:$0xff]  }
 0x104   : > { %1833 = vmatpush3.bf16.msra.mxu0 %v1965_v37  ;;  %1840 = vmatprep.mubr.msk.bf16.mxu0 %vm2017_vm0, %v2016_v1  ;;  %v1988_v37 = vld [vmem:[%s2395_s7 + $0x68] sm:$0xff]  }
 0x105   : > { %1834 = vmatprep.subr.bf16.mxu0 %v2016_v1 }
 0x108   : > { %1835 = vmatpush3.bf16.msra.mxu0 %v1967_v38  ;;  %v1985_v38 = vld [vmem:[%s2395_s7 + $0x38] sm:$0xff]  }
 0x109   : > { %1836 = vmatprep.subr.bf16.mxu0 %v2016_v1 }
 0x10c   : > { %1837 = vmatpush3.bf16.msra.mxu0 %v1969_v39  ;;  %v1987_v39 = vld [vmem:[%s2395_s7 + $0x30] sm:$0xff]  }
 0x10d   : > { %1838 = vmatprep.subr.bf16.mxu0 %v2016_v1 }
 0x110   : > { %1839 = vmatpush3.bf16.msra.mxu0 %v1971_v41  ;;  %v1989_v41 = vld [vmem:[%s2395_s7 + $0x28] sm:$0xff]  }
 0x111   : > { %1856 = vmatprep.subr.bf16.mxu0 %v2016_v1 }
 0x113   : > { %1841 = vmatmul.mubr.msk.bf16.vlgmr.msra.gmra.mxu0 %vm385_vm1, %v798_v47  ;;  %v1998_v47 = vld [vmem:[%s2395_s7 + $0x40] sm:$0xff]  }
 0x114   : > { %1864 = vmatprep.mubr.msk.bf16.mxu0 %vm2017_vm0, %v2016_v1  ;;  %1857 = vmatpush3.bf16.msra.mxu0 %v1973_v49  ;;  %v1997_v49 = vld [vmem:[%s2395_s7 + $0x8] sm:$0xff]  }
 0x115   : > { %1858 = vmatprep.subr.bf16.mxu0 %v2016_v1 }
 0x118   : > { %1859 = vmatpush3.bf16.msra.mxu0 %v1975_v51 }
 0x119   : > { %1860 = vmatprep.subr.bf16.mxu0 %v2016_v1 }
 0x11c   : > { %1861 = vmatpush3.bf16.msra.mxu0 %v1977_v53 }
 0x11d   : > { %1862 = vmatprep.subr.bf16.mxu0 %v2016_v1 }
 0x120   : > { %1863 = vmatpush3.bf16.msra.mxu0 %v1979_v55 }
 0x121   : > { %1880 = vmatprep.subr.bf16.mxu0 %v2016_v1 }
 0x1a3   : > { %v608_v56 = vpop.f32.mrf.mxu1 }
 0x1a5   : > { %v1806_v57 = vpop.f32.mrf.mxu1 }
 0x1a7   : > { %v611_v58 = vpop.f32.mrf.mxu1 }
 0x1a9   : > { %v1807_v59 = vpop.f32.mrf.mxu1 }
 0x1b3   : > { %v556_v60 = vpop.f32.mrf.mxu0  ;;  %v789_v23 = vpop.f32.mrf.mxu1 }
 0x1b4   : > { %v609_v62 = vadd.f32 %v608_v56, %v556_v60 }
 0x1b5   : > { %v1800_v63 = vpop.f32.mrf.mxu0  ;;  %v1830_v26 = vpop.f32.mrf.mxu1 }
 0x1b6   : > { %v622_v0 = vadd.f32 %v1576_v61, %v609_v62  ;;  %v1639_v63 = vld [vmem:[%s2396_s8] ss:$0 sm:$0xff] }
 0x1b7   : > { %v559_v2 = vpop.f32.mrf.mxu0  ;;  %v792_v29 = vpop.f32.mrf.mxu1 }
 0x1b8   : > { %635 = vst.msk [vmem:[#allocation3 + $0x1] sm:$0xff] %vm385_vm1, %v622_v0  ;;  %v612_v3 = vadd.f32 %v611_v58, %v559_v2 }
 0x1b9   : > { %v1801_v4 = vpop.f32.mrf.mxu0  ;;  %v1831_v32 = vpop.f32.mrf.mxu1 }
 0x1ba   : > { %v623_v5 = vadd.f32 %v1576_v61, %v612_v3 }
 0x1bc   : > { %636 = vst.msk [vmem:[#allocation3 + $0x9] sm:$0xff] %vm385_vm1, %v623_v5 }
 0x1bf   : > { %v878_v6 = vld [vmem:[#allocation3] sm:$0xff] }
 0x1c0   : > { %v959_v9 = vld [vmem:[#allocation3 + $0x1] sm:$0xff] }
 0x1c3   : > { %v879_v8 = vld [vmem:[#allocation3 + $0x8] sm:$0xff]  ;;  %v721_v11 = vpop.f32.mrf.mxu0 }
 0x1c4   : > { %v960_v10 = vld [vmem:[#allocation3 + $0x9] sm:$0xff]  ;;  %v880_v12 = vpack.c.bf16 %v879_v8, %v878_v6  ;;  %v790_v25 = vadd.f32 %v789_v23, %v721_v11  ;;  %v2000_v11 = vld [vmem:[%s2395_s7 + $0xb8] sm:$0xff]  }
 0x1c5   : > { %v961_v13 = vpack.c.bf16 %v960_v10, %v959_v9  ;;  %v1818_v14 = vpop.f32.mrf.mxu0  ;;  %v1041_v20 = vld [vmem:[#allocation3 + $0x2] sm:$0xff]  ;;  %v1042_v21 = vld [vmem:[#allocation3 + $0xa] sm:$0xff] }
 0x1c6   : > { %1853 = vmatmul.mubr.msk.bf16.vlgmr.msra.gmra.mxu1 %vm385_vm1, %v880_v12  ;;  %v1043_v22 = vpack.c.bf16 %v1042_v21, %v1041_v20  ;;  %v2005_v20 = vld [vmem:[%s2395_s7 + $0x90] sm:$0xff]   ;;  %v2006_v21 = vld [vmem:[%s2395_s7 + $0x88] sm:$0xff]  }
 0x1c7   : > { %1865 = vmatmul.mubr.msk.bf16.vlgmr.msra.gmra.mxu0 %vm385_vm1, %v961_v13  ;;  %1869 = vmatpush3.bf16.msra.mxu1 %v1980_v7  ;;  %v724_v16 = vpop.f32.mrf.mxu0  ;;  %v2001_v13 = vld [vmem:[%s2395_s7 + $0xb0] sm:$0xff]  }
 0x1c8   : > { %1876 = vmatprep.mubr.msk.bf16.mxu1 %vm2017_vm0, %v2016_v1  ;;  %1870 = vmatprep.subr.bf16.mxu1 %v2016_v1  ;;  %v793_v31 = vadd.f32 %v792_v29, %v724_v16  ;;  %v2002_v16 = vld [vmem:[%s2395_s7 + $0xa8] sm:$0xff]  }
 0x1c9   : > { %1896 = vmatprep.mubr.msk.bf16.mxu0 %vm2017_vm0, %v2016_v1  ;;  %v1819_v17 = vpop.f32.mrf.mxu0  ;;  %1881 = vmatpush3.bf16.msra.mxu0 %v1984_v35 }
 0x1ca   : > { %1882 = vmatprep.subr.bf16.mxu0 %v2016_v1 }
 0x1cb   : > { %1871 = vmatpush3.bf16.msra.mxu1 %v1981_v15 }
 0x1cc   : > { %1872 = vmatprep.subr.bf16.mxu1 %v2016_v1 }
 0x1cd   : > { %1883 = vmatpush3.bf16.msra.mxu0 %v1986_v36 }
 0x1ce   : > { %1884 = vmatprep.subr.bf16.mxu0 %v2016_v1 }
 0x1cf   : > { %1873 = vmatpush3.bf16.msra.mxu1 %v1982_v18  ;;  %v2003_v18 = vld [vmem:[%s2395_s7 + $0xa0] sm:$0xff]  }
 0x1d0   : > { %1874 = vmatprep.subr.bf16.mxu1 %v2016_v1 }
 0x1d1   : > { %1885 = vmatpush3.bf16.msra.mxu0 %v1988_v37 }
 0x1d2   : > { %1886 = vmatprep.subr.bf16.mxu0 %v2016_v1 }
 0x1d3   : > { %1875 = vmatpush3.bf16.msra.mxu1 %v1983_v19  ;;  %v869_v24 = vpop.f32.mrf.mxu0  ;;  %v2004_v19 = vld [vmem:[%s2395_s7 + $0x98] sm:$0xff]  }
 0x1d4   : > { %1900 = vmatprep.subr.bf16.mxu1 %v2016_v1  ;;  %v876_v28 = vadd.f32 %v869_v24, %v790_v25 }
 0x1d5   : > { %v1842_v27 = vpop.f32.mrf.mxu0  ;;  %1887 = vmatpush3.bf16.msra.mxu0 %v1990_v40 }
 0x1d6   : > { %1877 = vmatmul.mubr.msk.bf16.vlgmr.msra.gmra.mxu1 %vm385_vm1, %v1043_v22  ;;  %1888 = vmatprep.subr.bf16.mxu0 %v2016_v1  ;;  %v2007_v22 = vld [vmem:[%s2395_s7 + $0x80] sm:$0xff]  }
 0x1d7   : > { %1916 = vmatprep.mubr.msk.bf16.mxu1 %vm2017_vm0, %v2016_v1  ;;  %v872_v30 = vpop.f32.mrf.mxu0  ;;  %1901 = vmatpush3.bf16.msra.mxu1 %v1985_v38 }
 0x1d8   : > { %v877_v34 = vadd.f32 %v872_v30, %v793_v31  ;;  %1902 = vmatprep.subr.bf16.mxu1 %v2016_v1 }
 0x1d9   : > { %v1843_v33 = vpop.f32.mrf.mxu0  ;;  %1889 = vmatpush3.bf16.msra.mxu0 %v1992_v42 }
 0x1da   : > { %1890 = vmatprep.subr.bf16.mxu0 %v2016_v1 }
 0x1db   : > { %1903 = vmatpush3.bf16.msra.mxu1 %v1987_v39 }
 0x1dc   : > { %1904 = vmatprep.subr.bf16.mxu1 %v2016_v1 }
 0x1dd   : > { %1891 = vmatpush3.bf16.msra.mxu0 %v1994_v43 }
 0x1de   : > { %1892 = vmatprep.subr.bf16.mxu0 %v2016_v1 }
 0x1df   : > { %1905 = vmatpush3.bf16.msra.mxu1 %v1989_v41 }
 0x1e0   : > { %1906 = vmatprep.subr.bf16.mxu1 %v2016_v1 }
 0x1e1   : > { %1893 = vmatpush3.bf16.msra.mxu0 %v1996_v45 }
 0x1e2   : > { %1894 = vmatprep.subr.bf16.mxu0 %v2016_v1 }
 0x1e3   : > { %1907 = vmatpush3.bf16.msra.mxu1 %v1991_v44 }
 0x1e4   : > { %1908 = vmatprep.subr.bf16.mxu1 %v2016_v1 }
 0x1e5   : > { %1895 = vmatpush3.bf16.msra.mxu0 %v1998_v47 }
 0x1e6   : > { %1920 = vmatprep.subr.bf16.mxu0 %v2016_v1 }
 0x1e7   : > { %1909 = vmatpush3.bf16.msra.mxu1 %v1993_v46 }
 0x1e8   : > { %1910 = vmatprep.subr.bf16.mxu1 %v2016_v1 }
 0x1eb   : > { %1911 = vmatpush3.bf16.msra.mxu1 %v1995_v48 }
 0x1ec   : > { %1912 = vmatprep.subr.bf16.mxu1 %v2016_v1 }
 0x1ef   : > { %1913 = vmatpush3.bf16.msra.mxu1 %v1997_v49 }
 0x1f0   : > { %1914 = vmatprep.subr.bf16.mxu1 %v2016_v1 }
 0x1f3   : > { %1915 = vmatpush3.bf16.msra.mxu1 %v1999_v50 }
 0x286   : > { %v950_v51 = vpop.f32.mrf.mxu1 }
 0x287   : > { %v1032_v52 = vpop.f32.mrf.mxu0  ;;  %v957_v59 = vadd.f32 %v950_v51, %v876_v28 }
 0x288   : > { %v1854_v53 = vpop.f32.mrf.mxu1 }
 0x289   : > { %v1866_v54 = vpop.f32.mrf.mxu0  ;;  %v1039_v60 = vadd.f32 %v1032_v52, %v957_v59 }
 0x28a   : > { %v953_v55 = vpop.f32.mrf.mxu1 }
 0x28b   : > { %v1035_v56 = vpop.f32.mrf.mxu0  ;;  %v958_v61 = vadd.f32 %v953_v55, %v877_v34 }
 0x28c   : > { %v1855_v57 = vpop.f32.mrf.mxu1 }
 0x28d   : > { %v1867_v58 = vpop.f32.mrf.mxu0  ;;  %v1040_v3 = vadd.f32 %v1035_v56, %v958_v61 }
 0x296   : > { %v1114_v62 = vpop.f32.mrf.mxu1 }
 0x297   : > { %v1121_v0 = vadd.f32 %v1114_v62, %v1039_v60 }
 0x298   : > { %v1878_v2 = vpop.f32.mrf.mxu1 }
 0x299   : > { %v1128_v4 = vadd.f32 %v1639_v63, %v1121_v0 }
 0x29a   : > { %v1117_v5 = vpop.f32.mrf.mxu1 }
 0x29b   : > { %v1130_v6 = vmax.f32 %v1128_v4, 0.0  ;;  %v1122_v7 = vadd.f32 %v1117_v5, %v1040_v3 }
 0x29c   : > { %v1879_v8 = vpop.f32.mrf.mxu1 }
 0x29d   : > { %1134 = vst [vmem:[#allocation4 + $0x1] sm:$0xff] %v1130_v6  ;;  %v1129_v9 = vadd.f32 %v1639_v63, %v1122_v7 }
 0x29f   : > { %v1131_v10 = vmax.f32 %v1129_v9, 0.0 }
 0x2a1   : > { %1135 = vst [vmem:[#allocation4 + $0x9] sm:$0xff] %v1131_v10  ;;  %v1157_v12 = vpack.c.bf16 %v1131_v10, %v1130_v6 }
 0x2a3   : > { %1897 = vmatmul.mubr.bf16.vlgmr.msra.gmra.mxu0 %v1157_v12 }
 0x2a4   : > { %1921 = vmatpush3.bf16.msra.mxu0 %v2000_v11  ;;  %1936 = vmatprep.mubr.msk.bf16.mxu0 %vm2017_vm0, %v2016_v1  ;;  %v1136_v14 = vld [vmem:[#allocation4] sm:$0xff] }
 0x2a5   : > { %1922 = vmatprep.subr.bf16.mxu0 %v2016_v1 }
 0x2a8   : > { %v1137_v15 = vld [vmem:[#allocation4 + $0x8] sm:$0xff]  ;;  %1923 = vmatpush3.bf16.msra.mxu0 %v2001_v13 }
 0x2a9   : > { %v1138_v17 = vpack.c.bf16 %v1137_v15, %v1136_v14  ;;  %1924 = vmatprep.subr.bf16.mxu0 %v2016_v1  ;;  %v1353_v23 = vld [vmem:[#allocation4 + $0x2] sm:$0xff]  ;;  %v1354_v24 = vld [vmem:[#allocation4 + $0xa] sm:$0xff] }
 0x2aa   : > { %v1355_v25 = vpack.c.bf16 %v1354_v24, %v1353_v23 }
 0x2ab   : > { %1917 = vmatmul.mubr.bf16.vlgmr.msra.gmra.mxu1 %v1138_v17 }
 0x2ac   : > { %1925 = vmatpush3.bf16.msra.mxu0 %v2002_v16 }
 0x2ad   : > { %1926 = vmatprep.subr.bf16.mxu0 %v2016_v1 }
 0x2b0   : > { %1927 = vmatpush3.bf16.msra.mxu0 %v2003_v18 }
 0x2b1   : > { %1928 = vmatprep.subr.bf16.mxu0 %v2016_v1 }
 0x2b4   : > { %1929 = vmatpush3.bf16.msra.mxu0 %v2004_v19 }
 0x2b5   : > { %1930 = vmatprep.subr.bf16.mxu0 %v2016_v1 }
 0x2b8   : > { %1931 = vmatpush3.bf16.msra.mxu0 %v2005_v20 }
 0x2b9   : > { %1932 = vmatprep.subr.bf16.mxu0 %v2016_v1 }
 0x2bc   : > { %1933 = vmatpush3.bf16.msra.mxu0 %v2006_v21 }
 0x2bd   : > { %1934 = vmatprep.subr.bf16.mxu0 %v2016_v1  ;;  %v1696_v1 = vld [vmem:[%s2396_s8 + $0x1] ss:$0 sm:$0xff] }
 0x2c0   : > { %1935 = vmatpush3.bf16.msra.mxu0 %v2007_v22 }
 0x2c3   : > { %1937 = vmatmul.mubr.bf16.vlgmr.msra.gmra.mxu0 %v1355_v25 }
 0x363   : > { %v1257_v26 = vpop.f32.mrf.mxu0 }
 0x365   : > { %v1898_v27 = vpop.f32.mrf.mxu0 }
 0x367   : > { %v1260_v28 = vpop.f32.mrf.mxu0 }
 0x369   : > { %v1899_v29 = vpop.f32.mrf.mxu0 }
 0x36b   : > { %v1346_v30 = vpop.f32.mrf.mxu1 }
 0x36c   : > { %v1347_v34 = vadd.f32 %v1346_v30, %v1257_v26 }
 0x36d   : > { %v1918_v31 = vpop.f32.mrf.mxu1 }
 0x36f   : > { %v1349_v32 = vpop.f32.mrf.mxu1 }
 0x370   : > { %v1350_v38 = vadd.f32 %v1349_v32, %v1260_v28 }
 0x371   : > { %v1919_v33 = vpop.f32.mrf.mxu1 }
 0x383   : > { %v1455_v35 = vpop.f32.mrf.mxu0 }
 0x384   : > { %v1462_v36 = vadd.f32 %v1455_v35, %v1347_v34 }
 0x385   : > { %v1938_v37 = vpop.f32.mrf.mxu0 }
 0x386   : > { %v1469_v39 = vadd.f32 %v1696_v1, %v1462_v36 }
 0x387   : > { %v1458_v40 = vpop.f32.mrf.mxu0 }
 0x388   : > { %v1471_v41 = vmax.f32 %v1469_v39, 0.0  ;;  %v1463_v42 = vadd.f32 %v1458_v40, %v1350_v38 }
 0x389   : > { %v1939_v43 = vpop.f32.mrf.mxu0 }
 0x38a   : > { %1473 = vst [vmem:[%s349_s16] sm:$0xff] %v1471_v41  ;;  %v1470_v44 = vadd.f32 %v1696_v1, %v1463_v42 }
 0x38c   : > { %v1472_v45 = vmax.f32 %v1470_v44, 0.0 }
 0x38e   : > { %1474 = vst [vmem:[%s349_s16 + $0x8] sm:$0xff] %v1472_v45 }
 0x38f PF: > { %s19_s30 = sadd.s32 1, %s2014_s30  }
 0x390   : > { %p16_p4 = scmp.ge.s32.totalorder %s19_s30, 4  }
 0x392   :  { %18 = sbr.rel (!%p16_p4) target bundleno = 1 (0x1), region = 97 }

</bundles_post_ra>
